<compile_context>
chip_gen: v7x
topology: tpu7x:2x2x1
jax: 0.10.0
libtpu: 0.0.40
codegen_flags: <defaults>
</compile_context>

<pallas_src>
import functools

import jax
import jax.numpy as jnp
from jax import lax
from jax.experimental import pallas as pl
from jax.experimental.pallas import tpu as pltpu  # noqa: F401  (TPU backend)


def head_kernel(x_ref, w_ref, o_ref, *, batch, seq, head):
    # x_ref: (B*T, C) flattened activations; w_ref: (C, 3H) fused k|q|v weights.
    x = x_ref[...]            # (B*T, C) f32
    w = w_ref[...]            # (C, 3H)  f32

    # Single fused QKV projection on the MXU.
    qkv = jnp.dot(x, w, preferred_element_type=jnp.float32)   # (B*T, 3H)
    k = qkv[:, 0:head]
    q = qkv[:, head:2 * head]
    v = qkv[:, 2 * head:3 * head]

    scale = jnp.float32(head) ** -0.5

    # Causal mask: built once per kernel invocation, reused for all batches.
    row_ids = lax.broadcasted_iota(jnp.int32, (seq, seq), 0)
    col_ids = lax.broadcasted_iota(jnp.int32, (seq, seq), 1)
    causal = col_ids <= row_ids

    outs = []
    for b in range(batch):                    # static unrolled loop (B is tiny)
        lo = b * seq
        qb = q[lo:lo + seq, :]                # (T, H)
        kb = k[lo:lo + seq, :]
        vb = v[lo:lo + seq, :]

        # q @ k^T without materializing the transpose: contract head dims.
        scores = lax.dot_general(
            qb, kb,
            dimension_numbers=(((1,), (1,)), ((), ())),
            preferred_element_type=jnp.float32,
        ) * scale                             # (T, T)

        scores = jnp.where(causal, scores, jnp.float32(-1e30))

        # Numerically stable softmax; reciprocal goes to the (idle) EUP slot.
        m = jnp.max(scores, axis=-1, keepdims=True)
        p = jnp.exp(scores - m)
        denom = jnp.sum(p, axis=-1, keepdims=True)
        weights = p * pl.reciprocal(denom, approx=True)

        outs.append(jnp.dot(weights, vb, preferred_element_type=jnp.float32))

    # One contiguous (B*T, H) slab store.
    o_ref[...] = jnp.concatenate(outs, axis=0).astype(o_ref.dtype)


def head_forward(x, wk, wq, wv):
    """x: (B, T, C) float32; wk/wq/wv: (C, H) float32 -> (B, T, H)."""
    B, T, C = x.shape
    H = wk.shape[1]

    x2 = x.reshape(B * T, C)                       # flatten rows for the MXU
    w_qkv = jnp.concatenate([wk, wq, wv], axis=1)  # (C, 3H) fused weights

    out2 = pl.pallas_call(
        functools.partial(head_kernel, batch=B, seq=T, head=H),
        out_shape=jax.ShapeDtypeStruct((B * T, H), x.dtype),
        in_specs=[
            pl.BlockSpec((B * T, C), lambda: (0, 0)),
            pl.BlockSpec((C, 3 * H), lambda: (0, 0)),
        ],
        out_specs=pl.BlockSpec((B * T, H), lambda: (0, 0)),
    )(x2, w_qkv)

    return out2.reshape(B, T, H)


def reference_head(x, wk, wq, wv):
    """Pure-JAX reference mirroring the PyTorch forward (eval mode)."""
    B, T, C = x.shape
    H = wk.shape[1]
    k = x @ wk
    q = x @ wq
    v = x @ wv
    scores = (q @ jnp.swapaxes(k, -2, -1)) * (H ** -0.5)
    tril = jnp.tril(jnp.ones((T, T)))
    scores = jnp.where(tril == 0, -jnp.inf, scores)
    weights = jax.nn.softmax(scores, axis=-1)
    return weights @ v


if __name__ == "__main__":
    # Module hyper-params: n_embed=32, head_size=16, block_size=8, dropout=0.1
    B, T, C, H = 2, 8, 32, 16

    key = jax.random.PRNGKey(0)
    kx, kk, kq, kv = jax.random.split(key, 4)

    x = jax.random.normal(kx, (B, T, C), dtype=jnp.float32)
    # Deterministic "nn.Linear(bias=False)"-style weights, stored as (C, H).
    wk = jax.random.normal(kk, (C, H), dtype=jnp.float32) * (C ** -0.5)
    wq = jax.random.normal(kq, (C, H), dtype=jnp.float32) * (C ** -0.5)
    wv = jax.random.normal(kv, (C, H), dtype=jnp.float32) * (C ** -0.5)

    out = head_forward(x, wk, wq, wv)
    out = jax.block_until_ready(out)

    ref = reference_head(x, wk, wq, wv)
    assert out.shape == (B, T, H)
    # Tolerance relaxed slightly for the approximate (EUP) softmax reciprocal.
    assert jnp.allclose(out, ref, atol=5e-3, rtol=5e-3), "mismatch vs reference"

    print("KERNEL_OK")
</pallas_src>

<mosaic_0001>
module attributes {stable_mosaic.version = 11 : i64} {
  func.func @head_kernel(%arg0: memref<16x32xf32, #tpu.memory_space<vmem>>, %arg1: memref<32x48xf32, #tpu.memory_space<vmem>>, %arg2: memref<16x16xf32, #tpu.memory_space<vmem>>) attributes {dimension_semantics = [], scalar_prefetch = 0 : i64, scratch_operands = 0 : i64, tpu.core_type = #tpu.core_type<tc>} {
    %c0 = arith.constant 0 : index
    %c0_0 = arith.constant 0 : index
    %0 = vector.load %arg0[%c0, %c0_0] : memref<16x32xf32, #tpu.memory_space<vmem>>, vector<16x32xf32>
    %c0_1 = arith.constant 0 : index
    %c0_2 = arith.constant 0 : index
    %1 = vector.load %arg1[%c0_1, %c0_2] : memref<32x48xf32, #tpu.memory_space<vmem>>, vector<32x48xf32>
    %cst = arith.constant dense<0.000000e+00> : vector<16x48xf32>
    %2 = tpu.matmul %0, %1, %cst {dimension_numbers = #tpu.dot_dimension_numbers<[1], [0], [0], [1], [0, 0, 1, 1], [], []>} : vector<16x32xf32>, vector<32x48xf32>, vector<16x48xf32> -> vector<16x48xf32>
    %3 = vector.extract_strided_slice %2 {offsets = [0, 0], sizes = [16, 16], strides = [1, 1]} : vector<16x48xf32> to vector<16x16xf32>
    %4 = vector.extract_strided_slice %2 {offsets = [0, 16], sizes = [16, 16], strides = [1, 1]} : vector<16x48xf32> to vector<16x16xf32>
    %5 = vector.extract_strided_slice %2 {offsets = [0, 32], sizes = [16, 16], strides = [1, 1]} : vector<16x48xf32> to vector<16x16xf32>
    %cst_3 = arith.constant 1.600000e+01 : f32
    %cst_4 = arith.constant -5.000000e-01 : f32
    %6 = math.powf %cst_3, %cst_4 : f32
    %7 = tpu.iota {dimensions = array<i32: 0>} : vector<8x8xi32>
    %8 = tpu.iota {dimensions = array<i32: 1>} : vector<8x8xi32>
    %9 = arith.cmpi sle, %8, %7 : vector<8x8xi32>
    %10 = vector.extract_strided_slice %4 {offsets = [0, 0], sizes = [8, 16], strides = [1, 1]} : vector<16x16xf32> to vector<8x16xf32>
    %11 = vector.extract_strided_slice %3 {offsets = [0, 0], sizes = [8, 16], strides = [1, 1]} : vector<16x16xf32> to vector<8x16xf32>
    %12 = vector.extract_strided_slice %5 {offsets = [0, 0], sizes = [8, 16], strides = [1, 1]} : vector<16x16xf32> to vector<8x16xf32>
    %cst_5 = arith.constant dense<0.000000e+00> : vector<8x8xf32>
    %13 = tpu.matmul %10, %11, %cst_5 {dimension_numbers = #tpu.dot_dimension_numbers<[1], [1], [0], [0], [0, 0, 1, 0], [], []>} : vector<8x16xf32>, vector<8x16xf32>, vector<8x8xf32> -> vector<8x8xf32>
    %14 = vector.broadcast %6 : f32 to vector<8x8xf32>
    %15 = arith.mulf %13, %14 : vector<8x8xf32>
    %cst_6 = arith.constant -1.000000e+30 : f32
    %16 = vector.broadcast %cst_6 : f32 to vector<8x8xf32>
    %17 = arith.select %9, %15, %16 : vector<8x8xi1>, vector<8x8xf32>
    %cst_7 = arith.constant dense<0xFF800000> : vector<8xf32>
    %18 = vector.multi_reduction <maximumf>, %17, %cst_7 [1] : vector<8x8xf32> to vector<8xf32>
    %19 = vector.shape_cast %18 : vector<8xf32> to vector<8x1xf32>
    %20 = vector.broadcast %19 : vector<8x1xf32> to vector<8x8xf32>
    %21 = arith.subf %17, %20 : vector<8x8xf32>
    %22 = math.exp %21 : vector<8x8xf32>
    %cst_8 = arith.constant dense<0.000000e+00> : vector<8xf32>
    %23 = vector.multi_reduction <add>, %22, %cst_8 [1] : vector<8x8xf32> to vector<8xf32>
    %24 = vector.shape_cast %23 : vector<8xf32> to vector<8x1xf32>
    %25 = tpu.reciprocal %24 {approx = true} : vector<8x1xf32> -> vector<8x1xf32>
    %26 = vector.broadcast %25 : vector<8x1xf32> to vector<8x8xf32>
    %27 = arith.mulf %22, %26 : vector<8x8xf32>
    %cst_9 = arith.constant dense<0.000000e+00> : vector<8x16xf32>
    %28 = tpu.matmul %27, %12, %cst_9 {dimension_numbers = #tpu.dot_dimension_numbers<[1], [0], [0], [1], [0, 0, 1, 1], [], []>} : vector<8x8xf32>, vector<8x16xf32>, vector<8x16xf32> -> vector<8x16xf32>
    %29 = vector.extract_strided_slice %4 {offsets = [8, 0], sizes = [8, 16], strides = [1, 1]} : vector<16x16xf32> to vector<8x16xf32>
    %30 = vector.extract_strided_slice %3 {offsets = [8, 0], sizes = [8, 16], strides = [1, 1]} : vector<16x16xf32> to vector<8x16xf32>
    %31 = vector.extract_strided_slice %5 {offsets = [8, 0], sizes = [8, 16], strides = [1, 1]} : vector<16x16xf32> to vector<8x16xf32>
    %cst_10 = arith.constant dense<0.000000e+00> : vector<8x8xf32>
    %32 = tpu.matmul %29, %30, %cst_10 {dimension_numbers = #tpu.dot_dimension_numbers<[1], [1], [0], [0], [0, 0, 1, 0], [], []>} : vector<8x16xf32>, vector<8x16xf32>, vector<8x8xf32> -> vector<8x8xf32>
    %33 = vector.broadcast %6 : f32 to vector<8x8xf32>
    %34 = arith.mulf %32, %33 : vector<8x8xf32>
    %cst_11 = arith.constant -1.000000e+30 : f32
    %35 = vector.broadcast %cst_11 : f32 to vector<8x8xf32>
    %36 = arith.select %9, %34, %35 : vector<8x8xi1>, vector<8x8xf32>
    %cst_12 = arith.constant dense<0xFF800000> : vector<8xf32>
    %37 = vector.multi_reduction <maximumf>, %36, %cst_12 [1] : vector<8x8xf32> to vector<8xf32>
    %38 = vector.shape_cast %37 : vector<8xf32> to vector<8x1xf32>
    %39 = vector.broadcast %38 : vector<8x1xf32> to vector<8x8xf32>
    %40 = arith.subf %36, %39 : vector<8x8xf32>
    %41 = math.exp %40 : vector<8x8xf32>
    %cst_13 = arith.constant dense<0.000000e+00> : vector<8xf32>
    %42 = vector.multi_reduction <add>, %41, %cst_13 [1] : vector<8x8xf32> to vector<8xf32>
    %43 = vector.shape_cast %42 : vector<8xf32> to vector<8x1xf32>
    %44 = tpu.reciprocal %43 {approx = true} : vector<8x1xf32> -> vector<8x1xf32>
    %45 = vector.broadcast %44 : vector<8x1xf32> to vector<8x8xf32>
    %46 = arith.mulf %41, %45 : vector<8x8xf32>
    %cst_14 = arith.constant dense<0.000000e+00> : vector<8x16xf32>
    %47 = tpu.matmul %46, %31, %cst_14 {dimension_numbers = #tpu.dot_dimension_numbers<[1], [0], [0], [1], [0, 0, 1, 1], [], []>} : vector<8x8xf32>, vector<8x16xf32>, vector<8x16xf32> -> vector<8x16xf32>
    %48 = tpu.concatenate %28, %47 in 0 : vector<8x16xf32>, vector<8x16xf32> -> vector<16x16xf32>
    %c0_15 = arith.constant 0 : index
    %c0_16 = arith.constant 0 : index
    %49 = vector.load %arg2[%c0_15, %c0_16] : memref<16x16xf32, #tpu.memory_space<vmem>>, vector<16x16xf32>
    tpu.vector_store %arg2[%c0_15, %c0_16], %48 {strides = array<i32>} : memref<16x16xf32, #tpu.memory_space<vmem>>, vector<16x16xf32>,
    return
  }
}

</mosaic_0001>

<bundles_post_ra>
// kernel: tpu_custom_call.1
= control target key start
LH: loop header
LB: loop body
LE: loop exit
PB: predicated region body
PF: predicated region fallthrough
CT: control target
= control target key end

     0   :  { %7 = vsyncpa [#allocation3], 0  ;;  %s730_s0 = inlined_call_operand.hbm [shape: f32[16,32], index: 0, kind: input, shape index: {}]   ;;  %s731_s1 = inlined_call_operand.hbm [shape: f32[32,48], index: 1, kind: input, shape index: {}]   ;;  %s732_s2 = inlined_call_operand.hbm [shape: f32[16,16], index: 2, kind: output, shape index: {}]  }
   0x1   :  { %8 = vsyncpa [#allocation6], 0 }
   0x2   :  { %9 = vsyncpa [#allocation4], 0  ;;  %s637_s9 = smov [#allocation2]   ;;  %s565_s13 = scalar_lea.hbm %s730_s0, 256 }
   0x3   :  { %s15_s10 = sshll.u32 %s637_s9, 4  ;;  %p566_p0 = scmp.ne.s32.totalorder %s730_s0, %s565_s13  ;;  %s16_s10 = int_to_ptr.vmem [resolvable:$true] %s15_s10 }
   0x4   :  { %p569_p1 = scmp.lt.u32.totalorder %s565_s13, %s730_s0 }
   0x6   :  { %p571_p2 = pnand %p569_p1, %p566_p0 }
   0x8   :  { %574 = shalt.err (!%p571_p2)
}
   0x9   :  { %s575_s18 = scalar_lea.vmem %s16_s10, 256  ;;  %p580_p4 = scmp.lt.s32.totalorder %s16_s10, %s16_s10 }
   0xa   :  { %p576_p3 = scmp.ne.s32.totalorder %s16_s10, %s575_s18  ;;  %p581_p5 = scmp.lt.s32.totalorder %s575_s18, %s575_s18 }
   0xc   :  { %p582_p6 = por %p581_p5, %p580_p4 }
   0xe   :  { %p583_p7 = pnand %p582_p6, %p576_p3 }
  0x10   :  { %586 = shalt.err (!%p583_p7)
}
  0x11   :  { %s638_s19 = smov 128   ;;  %s639_s20 = smov 8  }
  0x12   :  { %21 = dma.hbm_to_vmem [thread:$0]  %s730_s0, 256, %s16_s10, [#allocation3], %s638_s19, %s638_s19, %s639_s20  }
  0x13   :  { %s640_s23 = smov [#allocation5]   ;;  %s587_s27 = scalar_lea.hbm %s731_s1, 512 }
  0x14   :  { %s27_s24 = sshll.u32 %s640_s23, 4  ;;  %p588_p8 = scmp.ne.s32.totalorder %s731_s1, %s587_s27  ;;  %s28_s24 = int_to_ptr.vmem [resolvable:$true] %s27_s24 }
  0x15   :  { %p591_p9 = scmp.lt.u32.totalorder %s587_s27, %s731_s1 }
  0x17   :  { %p593_p10 = pnand %p591_p9, %p588_p8 }
  0x19   :  { %596 = shalt.err (!%p593_p10)
}
  0x1a   :  { %s597_s4 = scalar_lea.vmem %s28_s24, 512  ;;  %p602_p12 = scmp.lt.s32.totalorder %s28_s24, %s28_s24 }
  0x1b   :  { %p598_p11 = scmp.ne.s32.totalorder %s28_s24, %s597_s4  ;;  %p603_p13 = scmp.lt.s32.totalorder %s597_s4, %s597_s4 }
  0x1d   :  { %p604_p0 = por %p603_p13, %p602_p12 }
  0x1f   :  { %p605_p1 = pnand %p604_p0, %p598_p11 }
  0x21   :  { %608 = shalt.err (!%p605_p1)
}
  0x22   :  { %33 = dma.hbm_to_vmem [thread:$0]  %s731_s1, 512, %s28_s24, [#allocation6], %s638_s19, %s638_s19, %s639_s20  }
  0x23   :  { %631 = dma.done.wait [#allocation3], 256  }
  0x24   :  { %632 = vsyncadd [#allocation3], 4294967040 }
  0x25   :  { %633 = dma.done.wait [#allocation6], 512  }
  0x26   :  { %634 = vsyncadd [#allocation6], 4294966784  ;;  %vm46_vm0 = vcmask 261120   ;;  %v42_v0 = vld [vmem:[#allocation5] sm:$0xff]  ;;  %v43_v1 = vld [vmem:[#allocation5 + $0x8] sm:$0xff]  ;;  %v641_v8 = vmov 0.0   ;;  %v128_v13 = vlaneseq }
  0x27   :  { %v44_v2 = vld [vmem:[#allocation5 + $0x10] sm:$0xff]  ;;  %v540_v3 = vpack.c.bf16 %v43_v1, %v42_v0  ;;  %v45_v4 = vld [vmem:[#allocation5 + $0x18] sm:$0xff]  ;;  %520 = vmatprep.subr.mxu1 %v641_v8  ;;  %vm642_vm1 = vmmov 0   ;;  %vm136_vm2 = vcmask 130048   ;;  %s643_s1 = smov 112   ;;  %vm213_vm4 = vcmask 64512  }
  0x28   :  { %v40_v5 = vld [vmem:[#allocation2] sm:$0xff]  ;;  %v544_v6 = vpack.c.bf16 %v45_v4, %v44_v2  ;;  %v41_v7 = vld [vmem:[#allocation2 + $0x8] sm:$0xff]  ;;  %522 = vmatprep.mubr.msk.f32.mxu1 %vm642_vm1, %v641_v8  ;;  %v129_v14 = vshrl.u32 %v128_v13, 7  ;;  %v131_v15 = vand.u32 127, %v128_v13  ;;  %s644_s6 = smov 96   ;;  %s645_s7 = smov [#allocation7]  }
  0x29   :  { %517 = vmatprep.mubr.msk.f32.mxu0 %vm46_vm0, %v40_v5  ;;  %541 = vmatprep.subr.bf16.mxu0 %v540_v3  ;;  %s474_s8 = sshll.u32 %s645_s7, 4  ;;  %s475_s8 = int_to_ptr.vmem [resolvable:$true] %s474_s8 }
  0x2a   :  { %543 = vmatpush3.bf16.msra.mxu0 %v540_v3  ;;  %vm132_vm3 = vcmp.le.s32.totalorder %v131_v15, %v129_v14  ;;  %s609_s9 = scalar_lea.vmem %s475_s8, 256  ;;  %p614_p3 = scmp.lt.s32.totalorder %s475_s8, %s475_s8 }
  0x2b   :  { %545 = vmatprep.subr.bf16.mxu0 %v544_v6  ;;  %p610_p2 = scmp.ne.s32.totalorder %s475_s8, %s609_s9  ;;  %p615_p4 = scmp.lt.s32.totalorder %s609_s9, %s609_s9 }
  0x2d   :  { %p616_p5 = por %p615_p4, %p614_p3 }
  0x2e   :  { %547 = vmatpush3.bf16.msra.mxu0 %v544_v6 }
  0x2f   :  { %530 = vmatprep.subr.mxu0 %v641_v8  ;;  %p617_p6 = pnand %p616_p5, %p610_p2 }
  0x31   :  { %518 = vmatmul.mubr.msk.f32.vlgmr.msra.gmra.mrb[0].mxu0 %vm46_vm0, %v41_v7 }
  0x32   :  { %532 = vmatprep.mubr.msk.f32.mxu0 %vm642_vm1, %v641_v8 }
 0x104   :  { %v519_v9 = vpop.f32.mrb[0].mxu0 }
 0x105   :  { %v119_v10 = vpop.f32.mrb[1].mxu0  ;;  %531 = vmatpush3.xpose.msk.msra.mxu0 %vm136_vm2, %v519_v9 }
 0x106   :  { %134 = vrot.lane.b32.xlu0 %v119_v10, %s643_s1  ;;  %521 = vmatpush3.xpose.msk.msra.mxu1 %vm136_vm2, %v119_v10 }
 0x107   :  { %525 = vmatprep.subr.mxu1 %v641_v8 }
 0x10a   :  { %302 = vrot.lane.b32.xlu0 %v519_v9, %s643_s1 }
 0x178   :  { %v135_v11 = vpop.permute.xlu0 %134 }
 0x179   :  { %523 = vmatmul.mubr.msk.f32.vlgmr.msra.gmra.mrb[0].mxu1 %vm136_vm2, %v135_v11 }
 0x17a   :  { %527 = vmatprep.mubr.msk.f32.mxu1 %vm642_vm1, %v641_v8 }
 0x17c   :  { %v303_v12 = vpop.permute.xlu0 %302 }
 0x17d   :  { %533 = vmatmul.mubr.msk.f32.vlgmr.msra.gmra.mrb[2].mxu0 %vm136_vm2, %v303_v12 }
 0x24c   :  { %v207_v16 = vpop.f32.mrb[0].mxu1 }
 0x24d   :  { %v211_v17 = vmul.f32 0.25, %v207_v16  ;;  %v524_v18 = vpop.f32.mrb[1].mxu1 }
 0x24f   :  { %v212_v19 = vsel %vm132_vm3, %v211_v17, -1e+30 }
 0x250   :  { %v374_v20 = vpop.f32.mrb[2].mxu0  ;;  %v214_v21 = vsel %vm213_vm4, %v212_v19, -inf }
 0x251   :  { %v378_v22 = vmul.f32 0.25, %v374_v20  ;;  %v534_v23 = vpop.f32.mrb[3].mxu0  ;;  %215 = vmax.xlane.f32.xlu1 %v214_v21 }
 0x253   :  { %v379_v24 = vsel %vm132_vm3, %v378_v22, -1e+30 }
 0x254   :  { %v380_v25 = vsel %vm213_vm4, %v379_v24, -inf }
 0x255   :  { %381 = vmax.xlane.f32.xlu1 %v380_v25 }
 0x2de   :  { %v216_v26 = vpop.xlane.xlu1 %215 }
 0x2df   :  { %v217_v27 = vsub.f32 %v212_v19, %v216_v26 }
 0x2e1   :  { %v218_v28 = vmul.f32 1.442695, %v217_v27 }
 0x2e2   :  { %v382_v29 = vpop.xlane.xlu1 %381 }
 0x2e3   :  { %557 = vpow2.f32 %v218_v28  ;;  %v383_v30 = vsub.f32 %v379_v24, %v382_v29 }
 0x2e5   :  { %v384_v31 = vmul.f32 1.442695, %v383_v30 }
 0x2e7   :  { %559 = vpow2.f32 %v384_v31 }
 0x2ed   :  { %v558_v32 = vpop.eup %557 }
 0x2ee   :  { %v220_v33 = vsel %vm213_vm4, %v558_v32, 0.0 }
 0x2ef   :  { %221 = vadd.xlane.f32.xlu0 %v220_v33 }
 0x2f1   :  { %v560_v34 = vpop.eup %559 }
 0x2f2   :  { %v386_v35 = vsel %vm213_vm4, %v560_v34, 0.0 }
 0x2f3   :  { %387 = vadd.xlane.f32.xlu1 %v386_v35 }
 0x304   :  { %225 = vrot.lane.b32.xlu1 %v119_v10, %s644_s6 }
 0x308   :  { %391 = vrot.lane.b32.xlu1 %v519_v9, %s644_s6 }
 0x37c   :  { %v222_v36 = vpop.xlane.xlu0 %221 }
 0x37d   :  { %561 = vrcp.f32 %v222_v36 }
 0x380   :  { %v388_v37 = vpop.xlane.xlu1 %387 }
 0x381   :  { %563 = vrcp.f32 %v388_v37 }
 0x384   :  { %v226_v38 = vpop.permute.xlu1 %225 }
 0x385   :  { %526 = vmatpush3.msra.mxu1 %v226_v38 }
 0x386   :  { %535 = vmatprep.subr.mxu1 %v641_v8 }
 0x387   :  { %v562_v39 = vpop.eup %561 }
 0x388   :  { %v224_v40 = vmul.f32 %v562_v39, %v558_v32  ;;  %v392_v41 = vpop.permute.xlu1 %391 }
 0x38a   :  { %528 = vmatmul.mubr.msk.f32.vlgmr.msra.gmra.mrb[2].mxu1 %vm213_vm4, %v224_v40 }
 0x38b   :  { %v564_v42 = vpop.eup %563  ;;  %536 = vmatpush3.msra.mxu1 %v392_v41  ;;  %537 = vmatprep.mubr.msk.f32.mxu1 %vm642_vm1, %v641_v8 }
 0x38c   :  { %v390_v43 = vmul.f32 %v564_v42, %v560_v34 }
 0x38e   :  { %538 = vmatmul.mubr.msk.f32.vlgmr.msra.gmra.mrb[4].mxu1 %vm213_vm4, %v390_v43 }
 0x45d   :  { %v297_v44 = vpop.f32.mrb[2].mxu1 }
 0x45e   :  { %467 = vst.msk [vmem:[#allocation7] sm:$0xff] %vm136_vm2, %v297_v44  ;;  %v529_v45 = vpop.f32.mrb[3].mxu1 }
 0x461   :  { %v463_v46 = vpop.f32.mrb[4].mxu1 }
 0x462   :  { %468 = vst.msk [vmem:[#allocation7 + $0x8] sm:$0xff] %vm136_vm2, %v463_v46  ;;  %v539_v47 = vpop.f32.mrb[5].mxu1 }
 0x463   :  { %620 = shalt.err (!%p617_p6)
}
 0x464   :  { %s621_s12 = scalar_lea.hbm %s732_s2, 256 }
 0x465   :  { %p622_p7 = scmp.ne.s32.totalorder %s732_s2, %s621_s12  ;;  %p625_p8 = scmp.lt.u32.totalorder %s621_s12, %s732_s2 }
 0x467   :  { %p627_p9 = pnand %p625_p8, %p622_p7 }
 0x469   :  { %630 = shalt.err (!%p627_p9)
}
 0x46a   :  { %480 = dma.vmem_to_hbm [thread:$0]  %s475_s8, 256, %s732_s2, [#allocation4], %s638_s19, %s638_s19, %s639_s20  }
 0x46b   :  { %635 = dma.done.wait [#allocation4], 256  }
 0x46c   :  { %636 = vsyncadd [#allocation4], 4294967040 }
 0x46d   :  { %484 = vsyncpa [#allocation3], 1 }
 0x46e   :  { %485 = vsyncpa [#allocation6], 1 }
 0x46f   :  { %486 = vsyncpa [#allocation4], 1 }

</bundles_post_ra>
